<compile_context>
chip_gen: v7x
topology: tpu7x:2x2x1
jax: 0.10.0
libtpu: 0.0.40
codegen_flags: <defaults>
</compile_context>

<pallas_src>
import functools

import jax
import jax.numpy as jnp
from jax.experimental import pallas as pl
from jax.experimental.pallas import tpu as pltpu

LANES = 128        # vreg lane width
SUBLANES = 8       # f32 vreg sublane depth
MAX_TM = 4096      # rows per tile: 2 MiB f32 input block, 8 MiB double-buffered
CHUNK_ROWS = 128   # rows folded into the accumulator per inner-loop step


def _int_pow(p, k):
    """p**k for a small static non-negative integer k (square-and-multiply)."""
    if k <= 0:
        return jnp.ones_like(p)
    result, base = None, p
    while True:
        if k & 1:
            result = base if result is None else result * base
        k >>= 1
        if not k:
            return result
        base = base * base


def _focal_elementwise(x, t, *, gamma, gamma_int, binary):
    """Per-element focal loss, PyTorch semantics, stable & transcendental-lean.

      bce      = x - x*t + max(-x,0) + log(exp(-max)+exp(-x-max))
               = max(x,0) - x*t + log1p(exp(-|x|))
      invprobs = logsigmoid(z),  z = -x*(2t-1)
      out      = exp(gamma*invprobs) * bce  ==  sigmoid(z)**gamma * bce
    """
    e = jnp.exp(-jnp.abs(x))                 # EUP #1 (shared with the modulator)
    sp = jnp.log1p(e)                        # EUP #2
    bce = jnp.maximum(x, 0.0) - x * t + sp

    if binary:
        # Hard 0/1 labels: |z| == |x|, so exp(-|z|)/log1p(exp(-|z|)) are reused.
        z = jnp.where(t > 0.0, -x, x)
        ez, spz = e, sp
    else:
        z = x * (1.0 - 2.0 * t)              # == -x*(2t-1), exact for soft targets
        ez = jnp.exp(-jnp.abs(z))            # EUP
        spz = None                           # only needed for non-integer gamma

    if gamma_int is not None:
        # sigmoid(z)**gamma, built stably from ez = exp(-|z|): no extra exp/log.
        p = jnp.where(z >= 0.0, 1.0, ez) / (1.0 + ez)
        mod = _int_pow(p, gamma_int)
    else:
        if spz is None:
            spz = jnp.log1p(ez)              # EUP
        invprobs = jnp.minimum(z, 0.0) - spz
        mod = jnp.exp(invprobs * gamma)      # EUP
    return mod * bce


def _focal_loss_kernel(x_ref, t_ref, o_ref, *, gamma, gamma_int, binary,
                       tm, steps, n_chunks, rem_rows, valid_rows):
    c = pl.program_id(0)   # TensorCore split axis ("parallel")
    i = pl.program_id(1)   # reduction axis        ("arbitrary")

    @pl.when(i == 0)
    def _():
        o_ref[...] = jnp.zeros_like(o_ref)

    row0 = (c * steps + i) * tm            # global row index of this tile's first row

    def fold(start, rows, acc):
        x = x_ref[pl.ds(start, rows), :].astype(jnp.float32)
        t = t_ref[pl.ds(start, rows), :].astype(jnp.float32)
        loss = _focal_elementwise(x, t, gamma=gamma, gamma_int=gamma_int,
                                  binary=binary)
        if valid_rows is not None:
            # Grid coverage overhangs the slab: zero garbage rows before folding
            # (must stay before the accumulation so stale VMEM never leaks in).
            gr = jax.lax.broadcasted_iota(jnp.int32, loss.shape, 0) + (row0 + start)
            loss = jnp.where(gr < valid_rows, loss, 0.0)
        # Whole-vreg sublane-group adds into the (8,128) carry.
        return acc + loss.reshape(-1, SUBLANES, LANES).sum(axis=0)

    acc = jnp.zeros((SUBLANES, LANES), jnp.float32)
    if n_chunks > 0:
        def body(k, a):
            return fold(pl.multiple_of(k * CHUNK_ROWS, CHUNK_ROWS), CHUNK_ROWS, a)
        acc = jax.lax.fori_loop(0, n_chunks, body, acc)
    if rem_rows:
        acc = fold(n_chunks * CHUNK_ROWS, rem_rows, acc)

    o_ref[...] += acc                      # one VMEM update per tile


def _num_tensorcores():
    """Best-effort TensorCores-per-chip for the leading 'parallel' grid axis."""
    try:
        info = pltpu.get_tpu_info()
        for name in ("num_cores", "num_tensorcores", "tensorcore_count",
                     "cores_per_chip"):
            v = getattr(info, name, None)
            if isinstance(v, int) and v > 0:
                return max(1, min(int(v), 2))
    except Exception:
        pass
    return 2   # shards across both TCs on v7x; harmless extra grid axis elsewhere


def _round_up(v, m):
    return ((v + m - 1) // m) * m


def focal_loss_pallas(x, target, gamma, *, binary_targets=None):
    if x.shape != target.shape:
        raise ValueError(
            "Target size ({}) must be the same as input size ({})".format(
                target.shape, x.shape))

    if binary_targets is None:  # auto: integer/bool targets are hard labels
        binary_targets = (jnp.issubdtype(target.dtype, jnp.integer)
                          or jnp.issubdtype(target.dtype, jnp.bool_))
    if not jnp.issubdtype(target.dtype, jnp.floating):
        target = target.astype(jnp.float32)

    gamma = float(gamma)
    gamma_int = int(gamma) if gamma.is_integer() and 0 <= gamma <= 8 else None

    n = x.size
    x_flat = x.reshape(-1)
    t_flat = target.reshape(-1)

    # <128-element lane tail: computed directly in JAX so lane-unaligned sizes
    # never force a whole-array pad/copy of both inputs.
    tail = n % LANES
    n_main = n - tail
    tail_sum = jnp.float32(0.0)
    if tail:
        tail_sum = jnp.sum(
            _focal_elementwise(x_flat[n_main:].astype(jnp.float32),
                               t_flat[n_main:].astype(jnp.float32),
                               gamma=gamma, gamma_int=gamma_int,
                               binary=bool(binary_targets)),
            dtype=jnp.float32)
    if n_main == 0:
        return tail_sum / n

    # Lane-dense (rows, 128) slab. Free reshape when n is lane-aligned; for odd
    # n only the main part is sliced (tail handled above).
    xs = (x_flat if tail == 0 else x_flat[:n_main]).reshape(-1, LANES)
    ts = (t_flat if tail == 0 else t_flat[:n_main]).reshape(-1, LANES)
    m = n_main // LANES

    # Sublane granularity: 8 rows for 32-bit inputs, 16 if any input is 16-bit.
    sub = SUBLANES
    if xs.dtype.itemsize == 2 or ts.dtype.itemsize == 2:
        sub = 16
    m_r = _round_up(m, sub)

    if m_r <= MAX_TM:
        n_split, steps, tm = 1, 1, m_r
    else:
        n_split = _num_tensorcores()
        steps = pl.cdiv(pl.cdiv(m_r, MAX_TM), n_split)
        tm = _round_up(pl.cdiv(m_r, n_split * steps), sub)

    coverage = n_split * steps * tm
    needs_mask = coverage > m
    last_block = pl.cdiv(m, tm) - 1        # last block index holding valid rows

    if tm <= CHUNK_ROWS:
        n_chunks, rem_rows = 0, tm
    else:
        n_chunks, rem_rows = tm // CHUNK_ROWS, tm % CHUNK_ROWS

    kernel = functools.partial(
        _focal_loss_kernel, gamma=gamma, gamma_int=gamma_int,
        binary=bool(binary_targets), tm=tm, steps=steps,
        n_chunks=n_chunks, rem_rows=rem_rows,
        valid_rows=(m if needs_mask else None))

    # Overhanging grid blocks are clamped onto the last valid block (their rows
    # are fully masked in-kernel), so no DMA ever starts past the slab.
    def in_index(c, i):
        return (jnp.minimum(c * steps + i, last_block), 0)

    n_transc = 2 if binary_targets else 3
    if gamma_int is None:
        n_transc += 1 if binary_targets else 2

    out = pl.pallas_call(
        kernel,
        out_shape=jax.ShapeDtypeStruct((n_split * SUBLANES, LANES), jnp.float32),
        grid_spec=pltpu.PrefetchScalarGridSpec(
            num_scalar_prefetch=0,
            grid=(n_split, steps),
            in_specs=[
                pl.BlockSpec((tm, LANES), in_index),
                pl.BlockSpec((tm, LANES), in_index),
            ],
            out_specs=pl.BlockSpec((SUBLANES, LANES), lambda c, i: (c, 0)),
        ),
        compiler_params=pltpu.CompilerParams(
            dimension_semantics=("parallel", "arbitrary"),
        ),
        cost_estimate=pl.CostEstimate(
            flops=20 * n_main,
            transcendentals=n_transc * n_main,
            bytes_accessed=(xs.size * xs.dtype.itemsize
                            + ts.size * ts.dtype.itemsize
                            + n_split * SUBLANES * LANES * 4),
        ),
    )(xs, ts)

    # Tiny epilogue: cross-lane sum of the per-core partial blocks + mean over n.
    return (jnp.sum(out, dtype=jnp.float32) + tail_sum) / n


def focal_loss_ref(x, target, gamma):
    x = x.astype(jnp.float32)
    t = target.astype(jnp.float32)
    max_val = jnp.maximum(-x, 0.0)                 # (-input).clamp(min=0)
    loss = x - x * t + max_val + jnp.log(jnp.exp(-max_val) + jnp.exp(-x - max_val))
    invprobs = jax.nn.log_sigmoid(-x * (t * 2.0 - 1.0))
    loss = jnp.exp(invprobs * gamma) * loss
    return jnp.mean(loss)


if __name__ == "__main__":
    key = jax.random.PRNGKey(0)
    # (shape, dtype, gamma, soft_targets, binary_targets_flag)
    cases = [
        ((2, 4, 16, 16),   jnp.float32,  2.0, False, True),   # fast path: binary + int gamma
        ((2, 4, 16, 20),   jnp.float32,  2.0, False, True),   # sublane-ragged -> masked block, no pad
        ((3, 5, 7, 11),    jnp.float32,  2.0, False, None),   # lane-unaligned -> JAX tail epilogue
        ((2, 4, 16, 16),   jnp.float32,  2.5, True,  False),  # soft targets, non-integer gamma
        ((2, 4, 16, 16),   jnp.bfloat16, 2.0, False, True),   # bf16 inputs, (16,128) tiles
        ((2, 4, 384, 512), jnp.float32,  2.0, False, True),   # split x steps x chunked loop
    ]
    for shape, dtype, gamma, soft, bflag in cases:
        k1, k2, key = jax.random.split(key, 3)
        x = jax.random.normal(k1, shape, dtype=jnp.float32).astype(dtype)
        if soft:
            t = jax.random.uniform(k2, shape, dtype=jnp.float32)
        else:
            t = (jax.random.uniform(k2, shape) > 0.5).astype(dtype)

        out = jax.block_until_ready(
            focal_loss_pallas(x, t, gamma, binary_targets=bflag))
        ref = focal_loss_ref(x, t, gamma)
        assert jnp.allclose(out, ref, rtol=1e-5, atol=1e-6), (shape, dtype, gamma, out, ref)

    print("KERNEL_OK")
</pallas_src>

<mosaic_0001>
module attributes {stable_mosaic.version = 11 : i64} {
  func.func @_focal_loss_kernel(%arg0: i32, %arg1: i32, %arg2: memref<16x128xf32, #tpu.memory_space<vmem>>, %arg3: memref<16x128xf32, #tpu.memory_space<vmem>>, %arg4: memref<8x128xf32, #tpu.memory_space<vmem>>) attributes {dimension_semantics = [#tpu.dimension_semantics<parallel>, #tpu.dimension_semantics<arbitrary>], iteration_bounds = array<i64: 1, 1>, scalar_prefetch = 0 : i64, scratch_operands = 0 : i64, tpu.core_type = #tpu.core_type<tc>, window_params = [{transform_indices = @transform_0, window_bounds = array<i64: 16, 128>}, {transform_indices = @transform_1, window_bounds = array<i64: 16, 128>}, {transform_indices = @transform_2, window_bounds = array<i64: 8, 128>}]} {
    %c0_i32 = arith.constant 0 : i32
    %0 = arith.cmpi eq, %arg1, %c0_i32 : i32
    %1 = arith.extui %0 : i1 to i32
    %c0_i32_0 = arith.constant 0 : i32
    %2 = arith.cmpi ne, %1, %c0_i32_0 : i32
    scf.if %2 {
      %cst_16 = arith.constant 0.000000e+00 : f32
      %36 = vector.broadcast %cst_16 : f32 to vector<8x128xf32>
      %c0_17 = arith.constant 0 : index
      %c0_18 = arith.constant 0 : index
      %37 = vector.load %arg4[%c0_17, %c0_18] : memref<8x128xf32, #tpu.memory_space<vmem>>, vector<8x128xf32>
      tpu.vector_store %arg4[%c0_17, %c0_18], %36 {strides = array<i32>} : memref<8x128xf32, #tpu.memory_space<vmem>>, vector<8x128xf32>,
    } else {
    }
    %cst = arith.constant 0.000000e+00 : f32
    %3 = vector.broadcast %cst : f32 to vector<8x128xf32>
    %c0 = arith.constant 0 : index
    %c0_1 = arith.constant 0 : index
    %4 = vector.load %arg2[%c0, %c0_1] : memref<16x128xf32, #tpu.memory_space<vmem>>, vector<16x128xf32>
    %c0_2 = arith.constant 0 : index
    %c0_3 = arith.constant 0 : index
    %5 = vector.load %arg3[%c0_2, %c0_3] : memref<16x128xf32, #tpu.memory_space<vmem>>, vector<16x128xf32>
    %6 = math.absf %4 : vector<16x128xf32>
    %cst_4 = arith.constant 0.000000e+00 : f32
    %7 = vector.broadcast %cst_4 : f32 to vector<16x128xf32>
    %8 = arith.subf %7, %6 : vector<16x128xf32>
    %9 = math.exp %8 : vector<16x128xf32>
    %10 = math.log1p %9 : vector<16x128xf32>
    %cst_5 = arith.constant 0.000000e+00 : f32
    %11 = vector.broadcast %cst_5 : f32 to vector<16x128xf32>
    %12 = arith.maximumf %4, %11 : vector<16x128xf32>
    %13 = arith.mulf %4, %5 : vector<16x128xf32>
    %14 = arith.subf %12, %13 : vector<16x128xf32>
    %15 = arith.addf %14, %10 : vector<16x128xf32>
    %cst_6 = arith.constant 0.000000e+00 : f32
    %16 = vector.broadcast %cst_6 : f32 to vector<16x128xf32>
    %17 = arith.cmpf ogt, %5, %16 : vector<16x128xf32>
    %cst_7 = arith.constant 0.000000e+00 : f32
    %18 = vector.broadcast %cst_7 : f32 to vector<16x128xf32>
    %19 = arith.subf %18, %4 : vector<16x128xf32>
    %20 = arith.select %17, %19, %4 : vector<16x128xi1>, vector<16x128xf32>
    %cst_8 = arith.constant 0.000000e+00 : f32
    %21 = vector.broadcast %cst_8 : f32 to vector<16x128xf32>
    %22 = arith.cmpf oge, %20, %21 : vector<16x128xf32>
    %cst_9 = arith.constant 1.000000e+00 : f32
    %23 = vector.broadcast %cst_9 : f32 to vector<16x128xf32>
    %24 = arith.select %22, %23, %9 : vector<16x128xi1>, vector<16x128xf32>
    %cst_10 = arith.constant 1.000000e+00 : f32
    %25 = vector.broadcast %cst_10 : f32 to vector<16x128xf32>
    %26 = arith.addf %25, %9 : vector<16x128xf32>
    %27 = arith.divf %24, %26 : vector<16x128xf32>
    %28 = arith.mulf %27, %27 : vector<16x128xf32>
    %29 = arith.mulf %28, %15 : vector<16x128xf32>
    %30 = vector.shape_cast %29 : vector<16x128xf32> to vector<2x8x128xf32>
    %cst_11 = arith.constant dense<0.000000e+00> : vector<8x128xf32>
    %31 = vector.multi_reduction <add>, %30, %cst_11 [0] : vector<2x8x128xf32> to vector<8x128xf32>
    %32 = arith.addf %3, %31 : vector<8x128xf32>
    %c0_12 = arith.constant 0 : index
    %c0_13 = arith.constant 0 : index
    %33 = vector.load %arg4[%c0_12, %c0_13] : memref<8x128xf32, #tpu.memory_space<vmem>>, vector<8x128xf32>
    %34 = arith.addf %33, %32 : vector<8x128xf32>
    %c0_14 = arith.constant 0 : index
    %c0_15 = arith.constant 0 : index
    %35 = vector.load %arg4[%c0_14, %c0_15] : memref<8x128xf32, #tpu.memory_space<vmem>>, vector<8x128xf32>
    tpu.vector_store %arg4[%c0_14, %c0_15], %34 {strides = array<i32>} : memref<8x128xf32, #tpu.memory_space<vmem>>, vector<8x128xf32>,
    return
  }
  func.func @transform_0(%arg0: i32, %arg1: i32) -> (i32, i32) {
    %c1_i32 = arith.constant 1 : i32
    %0 = arith.muli %arg0, %c1_i32 : i32
    %1 = arith.addi %0, %arg1 : i32
    %c0_i32 = arith.constant 0 : i32
    %2 = arith.minsi %1, %c0_i32 : i32
    %c0_i32_0 = arith.constant 0 : i32
    %c0_i32_1 = arith.constant 0 : i32
    return %2, %c0_i32_0 : i32, i32
  }
  func.func @transform_1(%arg0: i32, %arg1: i32) -> (i32, i32) {
    %c1_i32 = arith.constant 1 : i32
    %0 = arith.muli %arg0, %c1_i32 : i32
    %1 = arith.addi %0, %arg1 : i32
    %c0_i32 = arith.constant 0 : i32
    %2 = arith.minsi %1, %c0_i32 : i32
    %c0_i32_0 = arith.constant 0 : i32
    %c0_i32_1 = arith.constant 0 : i32
    return %2, %c0_i32_0 : i32, i32
  }
  func.func @transform_2(%arg0: i32, %arg1: i32) -> (i32, i32) {
    %c0_i32 = arith.constant 0 : i32
    %c0_i32_0 = arith.constant 0 : i32
    return %arg0, %c0_i32 : i32, i32
  }
}

</mosaic_0001>

<bundles_post_ra>
// kernel: tpu_custom_call.1
= control target key start
LH: loop header
LB: loop body
LE: loop exit
PB: predicated region body
PF: predicated region fallthrough
CT: control target
= control target key end

     0   :  { %7 = vsyncpa [#allocation3], 0  ;;  %s294_s0 = inlined_call_operand.hbm [shape: f32[16,128], index: 0, kind: input, shape index: {}]   ;;  %s295_s1 = inlined_call_operand.hbm [shape: f32[16,128], index: 1, kind: input, shape index: {}]   ;;  %s296_s2 = inlined_call_operand.hbm [shape: f32[8,128], index: 2, kind: output, shape index: {}]  }
   0x1   :  { %8 = vsyncpa [#allocation6], 0 }
   0x2   :  { %9 = vsyncpa [#allocation4], 0  ;;  %s238_s9 = smov [#allocation2]   ;;  %s166_s13 = scalar_lea.hbm %s294_s0, 256 }
   0x3   :  { %s21_s10 = sshll.u32 %s238_s9, 4  ;;  %p167_p0 = scmp.ne.s32.totalorder %s294_s0, %s166_s13  ;;  %s22_s10 = int_to_ptr.vmem [resolvable:$true] %s21_s10 }
   0x4   :  { %p170_p1 = scmp.lt.u32.totalorder %s166_s13, %s294_s0 }
   0x6   :  { %p172_p2 = pnand %p170_p1, %p167_p0 }
   0x8   :  { %175 = shalt.err (!%p172_p2)
}
   0x9   :  { %s176_s18 = scalar_lea.vmem %s22_s10, 256  ;;  %p181_p4 = scmp.lt.s32.totalorder %s22_s10, %s22_s10 }
   0xa   :  { %p177_p3 = scmp.ne.s32.totalorder %s22_s10, %s176_s18  ;;  %p182_p5 = scmp.lt.s32.totalorder %s176_s18, %s176_s18 }
   0xc   :  { %p183_p6 = por %p182_p5, %p181_p4 }
   0xe   :  { %p184_p7 = pnand %p183_p6, %p177_p3 }
  0x10   :  { %187 = shalt.err (!%p184_p7)
}
  0x11   :  { %s239_s19 = smov 128   ;;  %s240_s20 = smov 8  }
  0x12   :  { %27 = dma.hbm_to_vmem [thread:$0]  %s294_s0, 256, %s22_s10, [#allocation3], %s239_s19, %s239_s19, %s240_s20  }
  0x13   :  { %s241_s23 = smov [#allocation5]   ;;  %s188_s27 = scalar_lea.hbm %s295_s1, 256 }
  0x14   :  { %s39_s24 = sshll.u32 %s241_s23, 4  ;;  %p189_p8 = scmp.ne.s32.totalorder %s295_s1, %s188_s27  ;;  %s40_s24 = int_to_ptr.vmem [resolvable:$true] %s39_s24 }
  0x15   :  { %p192_p9 = scmp.lt.u32.totalorder %s188_s27, %s295_s1 }
  0x17   :  { %p194_p10 = pnand %p192_p9, %p189_p8 }
  0x19   :  { %197 = shalt.err (!%p194_p10)
}
  0x1a   :  { %s198_s4 = scalar_lea.vmem %s40_s24, 256  ;;  %p203_p12 = scmp.lt.s32.totalorder %s40_s24, %s40_s24 }
  0x1b   :  { %p199_p11 = scmp.ne.s32.totalorder %s40_s24, %s198_s4  ;;  %p204_p13 = scmp.lt.s32.totalorder %s198_s4, %s198_s4 }
  0x1d   :  { %p205_p0 = por %p204_p13, %p203_p12 }
  0x1f   :  { %p206_p1 = pnand %p205_p0, %p199_p11 }
  0x21   :  { %209 = shalt.err (!%p206_p1)
}
  0x22   :  { %45 = dma.hbm_to_vmem [thread:$0]  %s295_s1, 256, %s40_s24, [#allocation6], %s239_s19, %s239_s19, %s240_s20  }
  0x23   :  { %232 = dma.done.wait [#allocation3], 256  }
  0x24   :  { %233 = vsyncadd [#allocation3], 4294967040 }
  0x25   :  { %234 = dma.done.wait [#allocation6], 256  }
  0x26   :  { %235 = vsyncadd [#allocation6], 4294967040  ;;  %v65_v0 = vld [vmem:[#allocation2] sm:$0xff]  ;;  %v66_v1 = vld [vmem:[#allocation2 + $0x8] sm:$0xff]  ;;  %s242_s1 = smov [#allocation7]  }
  0x27   :  { %v69_v2 = vand.u32 2147483647, %v65_v0  ;;  %v70_v3 = vand.u32 2147483647, %v66_v1  ;;  %v67_v10 = vld [vmem:[#allocation5] sm:$0xff]  ;;  %v68_v12 = vld [vmem:[#allocation5 + $0x8] sm:$0xff] }
  0x28   :  { %v105_v14 = vsub.f32 0.0, %v65_v0  ;;  %vm103_vm0 = vcmp.gt.f32.partialorder %v67_v10, 0.0  ;;  %v106_v16 = vsub.f32 0.0, %v66_v1  ;;  %vm104_vm1 = vcmp.gt.f32.partialorder %v68_v12, 0.0  ;;  %s134_s6 = sshll.u32 %s242_s1, 4  ;;  %s135_s6 = int_to_ptr.vmem [resolvable:$true] %s134_s6 }
  0x29   :  { %v71_v4 = vsub.f32 0.0, %v69_v2  ;;  %v72_v5 = vsub.f32 0.0, %v70_v3  ;;  %v95_v23 = vmax.f32 %v65_v0, 0.0  ;;  %v97_v24 = vmul.f32 %v67_v10, %v65_v0  ;;  %s210_s7 = scalar_lea.vmem %s135_s6, 128  ;;  %p215_p3 = scmp.lt.s32.totalorder %s135_s6, %s135_s6 }
  0x2a   :  { %v107_v18 = vsel %vm103_vm0, %v105_v14, %v65_v0  ;;  %v108_v20 = vsel %vm104_vm1, %v106_v16, %v66_v1  ;;  %v96_v26 = vmax.f32 %v66_v1, 0.0  ;;  %v98_v27 = vmul.f32 %v68_v12, %v66_v1  ;;  %p211_p2 = scmp.ne.s32.totalorder %s135_s6, %s210_s7  ;;  %p216_p4 = scmp.lt.s32.totalorder %s210_s7, %s210_s7 }
  0x2b   :  { %v73_v6 = vmul.f32 1.442695, %v71_v4  ;;  %v75_v7 = vmul.f32 1.442695, %v72_v5  ;;  %vm109_vm2 = vcmp.ge.f32.partialorder %v107_v18, 0.0  ;;  %vm110_vm3 = vcmp.ge.f32.partialorder %v108_v20, 0.0 }
  0x2c   :  { %v99_v31 = vsub.f32 %v95_v23, %v97_v24  ;;  %v100_v35 = vsub.f32 %v96_v26, %v98_v27  ;;  %p217_p5 = por %p216_p4, %p215_p3 }
  0x2d   :  { %154 = vpow2.f32 %v73_v6 }
  0x2e   :  { %156 = vpow2.f32 %v75_v7  ;;  %p218_p6 = pnand %p217_p5, %p211_p2 }
  0x37   :  { %v155_v8 = vpop.eup %154 }
  0x38   :  { %v157_v9 = vpop.eup %156  ;;  %v77_v11 = vadd.f32 1.0, %v155_v8  ;;  %v80_v15 = vmul.f32 -0.5, %v155_v8  ;;  %v83_v21 = vand.u32 2147483647, %v155_v8  ;;  %v111_v32 = vsel %vm109_vm2, 1.0, %v155_v8 }
  0x39   :  { %v86_v13 = vadd.f32 1.0, %v157_v9  ;;  %v89_v17 = vmul.f32 -0.5, %v157_v9  ;;  %v92_v25 = vand.u32 2147483647, %v157_v9  ;;  %v112_v36 = vsel %vm110_vm3, 1.0, %v157_v9 }
  0x3a   :  { %158 = vlog2.f32 %v77_v11  ;;  %v81_v19 = vadd.f32 1.0, %v80_v15  ;;  %vm84_vm4 = vcmp.lt.f32.partialorder %v83_v21, 0.0004427343 }
  0x3b   :  { %160 = vlog2.f32 %v86_v13  ;;  %v90_v22 = vadd.f32 1.0, %v89_v17  ;;  %vm93_vm5 = vcmp.lt.f32.partialorder %v92_v25, 0.0004427343 }
  0x3c   :  { %162 = vrcp.f32 %v77_v11  ;;  %v82_v28 = vmul.f32 %v155_v8, %v81_v19 }
  0x3d   :  { %164 = vrcp.f32 %v86_v13  ;;  %v91_v30 = vmul.f32 %v157_v9, %v90_v22 }
  0x44   :  { %v159_v29 = vpop.eup %158 }
  0x45   :  { %v161_v33 = vpop.eup %160  ;;  %v79_v34 = vmul.f32 0.6931472, %v159_v29 }
  0x46   :  { %v163_v37 = vpop.eup %162  ;;  %v88_v38 = vmul.f32 0.6931472, %v161_v33 }
  0x47   :  { %v165_v39 = vpop.eup %164  ;;  %v85_v40 = vsel %vm84_vm4, %v82_v28, %v79_v34  ;;  %v116_v41 = vmul.f32 %v163_v37, %v111_v32 }
  0x48   :  { %v94_v42 = vsel %vm93_vm5, %v91_v30, %v88_v38  ;;  %v101_v43 = vadd.f32 %v99_v31, %v85_v40  ;;  %v118_v44 = vmul.f32 %v165_v39, %v112_v36 }
  0x49   :  { %v102_v45 = vadd.f32 %v100_v35, %v94_v42  ;;  %v119_v46 = vmul.f32 %v116_v41, %v116_v41 }
  0x4a   :  { %v120_v47 = vmul.f32 %v118_v44, %v118_v44 }
  0x4b   :  { %v121_v48 = vmul.f32 %v119_v46, %v101_v43 }
  0x4c   :  { %v122_v49 = vmul.f32 %v120_v47, %v102_v45 }
  0x4e   :  { %v123_v50 = vadd.f32 %v122_v49, %v121_v48 }
  0x50   :  { %127 = vst [vmem:[#allocation7] sm:$0xff] %v123_v50 }
  0x51   :  { %221 = shalt.err (!%p218_p6)
}
  0x52   :  { %s222_s10 = scalar_lea.hbm %s296_s2, 128 }
  0x53   :  { %p223_p7 = scmp.ne.s32.totalorder %s296_s2, %s222_s10  ;;  %p226_p8 = scmp.lt.u32.totalorder %s222_s10, %s296_s2 }
  0x55   :  { %p228_p9 = pnand %p226_p8, %p223_p7 }
  0x57   :  { %231 = shalt.err (!%p228_p9)
}
  0x58   :  { %137 = dma.vmem_to_hbm [thread:$0]  %s135_s6, 128, %s296_s2, [#allocation4]  }
  0x59   :  { %236 = dma.done.wait [#allocation4], 128  }
  0x5a   :  { %237 = vsyncadd [#allocation4], 4294967168 }
  0x5b   :  { %141 = vsyncpa [#allocation3], 1 }
  0x5c   :  { %142 = vsyncpa [#allocation6], 1 }
  0x5d   :  { %143 = vsyncpa [#allocation4], 1 }

</bundles_post_ra>
